<compile_context>
chip_gen: v7x
topology: tpu7x:2x2x1
jax: 0.10.0
libtpu: 0.0.40
codegen_flags: <defaults>
</compile_context>

<pallas_src>
import functools

import jax
import jax.numpy as jnp
from jax.experimental import pallas as pl
from jax.experimental.pallas import tpu as pltpu


NEG_BIG = -1e30  # finite "minus infinity" for masked logits (avoids NaN rows)


# ----------------------------------------------------------------------------
# Helpers
# ----------------------------------------------------------------------------
def _pick_tile(dim, target, align):
    """Largest tile <= target that evenly divides `dim` and respects TPU
    alignment; falls back to the full dimension (always a legal block)."""
    if dim <= target:
        return dim
    start = target - (target % align)
    for cand in range(start, 0, -align):
        if dim % cand == 0:
            return cand
    return dim


def _sublane_align(dtype):
    # 8 rows for 4-byte dtypes, 16 for bf16/fp16, 32 for int8/fp8.
    return 8 * max(1, 4 // jnp.dtype(dtype).itemsize)


# ----------------------------------------------------------------------------
# Tiled linear kernel: y = x @ w + b   (w pre-transposed to [in, out])
# ----------------------------------------------------------------------------
def _linear_kernel(x_ref, w_ref, b_ref, o_ref, acc_ref):
    k = pl.program_id(2)

    @pl.when(k == 0)
    def _():
        acc_ref[...] = jnp.zeros_like(acc_ref)

    acc_ref[...] += jnp.dot(x_ref[...], w_ref[...],
                            preferred_element_type=jnp.float32)

    @pl.when(k == pl.num_programs(2) - 1)
    def _():
        # bias is [1, tn]; broadcasts over the tm rows.
        o_ref[...] = (acc_ref[...] + b_ref[...].astype(jnp.float32)
                      ).astype(o_ref.dtype)


def linear_pallas(x, w_t, b, out_dtype=None, tm=512, tn=512, tk=1024):
    # x: [M, K], w_t: [K, N], b: [1, N]
    M, K = x.shape
    N = w_t.shape[1]
    out_dtype = out_dtype if out_dtype is not None else x.dtype

    tm = _pick_tile(M, tm, _sublane_align(x.dtype))
    tk = _pick_tile(K, tk, 128)   # K <= 1024 -> tk = K, k-axis collapses to 1
    tn = _pick_tile(N, tn, 128)
    grid = (M // tm, N // tn, K // tk)

    return pl.pallas_call(
        _linear_kernel,
        out_shape=jax.ShapeDtypeStruct((M, N), out_dtype),
        grid_spec=pltpu.PrefetchScalarGridSpec(
            num_scalar_prefetch=0,
            grid=grid,
            in_specs=[
                pl.BlockSpec((tm, tk), lambda i, j, k: (i, k)),
                pl.BlockSpec((tk, tn), lambda i, j, k: (k, j)),
                pl.BlockSpec((1, tn), lambda i, j, k: (0, j)),
            ],
            out_specs=pl.BlockSpec((tm, tn), lambda i, j, k: (i, j)),
            scratch_shapes=[pltpu.VMEM((tm, tn), jnp.float32)],
        ),
        compiler_params=pltpu.CompilerParams(
            dimension_semantics=("parallel", "parallel", "arbitrary")),
    )(x, w_t, b)


# ----------------------------------------------------------------------------
# Fused attention + out_proj kernel.
#   grid = (B, T // tq), both axes "parallel".
#   q_ref    : (1, tq, 3E)  query-tile rows of qkv
#   kv_ref   : (1, T, 3E)   full qkv rows (keys/values); constant over qi
#   mask_ref : (1, 1, S)    additive key-padding term (0.0 or NEG_BIG), fp32
#   bias_ref : (1, H, tq, S)
#   w_out_ref: (E, E)       resident (constant index_map)
#   b_out_ref: (1, E)
#   o_ref    : (1, tq, E)   final projected output (lane-dense)
#   acc_ref  : (tq, E) fp32 VMEM scratch accumulating sum_h o_h @ W_out[h]
# Softmax scaling is already folded into the Q columns of the in_proj weights.
# ----------------------------------------------------------------------------
def _attn_kernel(q_ref, kv_ref, mask_ref, bias_ref, w_out_ref, b_out_ref,
                 o_ref, acc_ref, *, num_heads, head_dim):
    H, D = num_heads, head_dim
    E = H * D
    mask_add = mask_ref[0].astype(jnp.float32)                 # [1, S]

    for h in range(H):   # static unroll; per-head temporaries die each iter
        q = q_ref[0, :, h * D:(h + 1) * D]                     # [tq, D]
        k = kv_ref[0, :, E + h * D:E + (h + 1) * D]            # [S,  D]
        v = kv_ref[0, :, 2 * E + h * D:2 * E + (h + 1) * D]    # [S,  D]

        s = jnp.einsum("td,sd->ts", q, k,
                       preferred_element_type=jnp.float32)     # [tq, S]
        s = s + mask_add + bias_ref[0, h].astype(jnp.float32)

        m = jnp.max(s, axis=-1, keepdims=True)
        p = jnp.exp(s - m)                                     # unnormalized
        denom = jnp.sum(p, axis=-1, keepdims=True)             # [tq, 1]

        o_h = jnp.dot(p.astype(v.dtype), v,
                      preferred_element_type=jnp.float32)      # [tq, D]
        o_h = o_h / denom                        # post-PV normalization (exact)

        w_h = w_out_ref[h * D:(h + 1) * D, :]                  # [D, E] static
        contrib = jnp.dot(o_h.astype(w_h.dtype), w_h,
                          preferred_element_type=jnp.float32)  # [tq, E]
        if h == 0:
            acc_ref[...] = contrib
        else:
            acc_ref[...] += contrib

    o_ref[0] = (acc_ref[...] + b_out_ref[...].astype(jnp.float32)
                ).astype(o_ref.dtype)


def attention_out_proj_pallas(qkv, mask_add, bias, w_out_t, b_out,
                              num_heads, head_dim, tq_target=128):
    B, T, three_e = qkv.shape
    H = num_heads
    E = H * head_dim
    S = T
    tq = _pick_tile(T, tq_target, 8)
    kernel = functools.partial(_attn_kernel, num_heads=H, head_dim=head_dim)

    return pl.pallas_call(
        kernel,
        out_shape=jax.ShapeDtypeStruct((B, T, E), qkv.dtype),
        grid_spec=pltpu.PrefetchScalarGridSpec(
            num_scalar_prefetch=0,
            grid=(B, T // tq),
            in_specs=[
                # query tile (advances with qi)
                pl.BlockSpec((1, tq, three_e), lambda b, qi: (b, qi, 0)),
                # full qkv rows for K/V; constant over qi -> no re-DMA
                pl.BlockSpec((1, T, three_e), lambda b, qi: (b, 0, 0)),
                # additive key-padding mask
                pl.BlockSpec((1, 1, S), lambda b, qi: (b, 0, 0)),
                # attention bias, tiled over query rows
                pl.BlockSpec((1, H, tq, S), lambda b, qi: (b, 0, qi, 0)),
                # out_proj weight/bias, resident
                pl.BlockSpec((E, E), lambda b, qi: (0, 0)),
                pl.BlockSpec((1, E), lambda b, qi: (0, 0)),
            ],
            out_specs=pl.BlockSpec((1, tq, E), lambda b, qi: (b, qi, 0)),
            scratch_shapes=[pltpu.VMEM((tq, E), jnp.float32)],
        ),
        compiler_params=pltpu.CompilerParams(
            dimension_semantics=("parallel", "parallel"),
            # Explicit limit: fits v7x's 64 MiB physical VMEM with headroom,
            # and raises the 16/32 MiB default scoped limit on v5e/v6e.
            vmem_limit_bytes=48 * 1024 * 1024),
    )(qkv, qkv, mask_add, bias, w_out_t, b_out)


# ----------------------------------------------------------------------------
# Parameter prep: fold softmax scaling into the Q columns of in_proj.
# The fold is done in fp32 and cast back to the parameter dtype.
# ----------------------------------------------------------------------------
def prepare_params(params, num_heads, scaling_factor=1):
    w_in, b_in = params["w_in_t"], params["b_in"]
    E = w_in.shape[0]
    D = E // num_heads
    scaling = (D * scaling_factor) ** (-0.5)
    w32 = w_in.astype(jnp.float32).at[:, :E].multiply(scaling)
    b32 = b_in.astype(jnp.float32).at[:, :E].multiply(scaling)
    return {
        "w_in_t": w32.astype(w_in.dtype),
        "b_in": b32.astype(b_in.dtype),
        "w_out_t": params["w_out_t"],
        "b_out": params["b_out"],
    }


# ----------------------------------------------------------------------------
# Full module forward (glue is plain JAX — only free reshapes, no transposes)
# ----------------------------------------------------------------------------
def self_mha_forward(query, key_padding_mask, attn_bias, params, num_heads):
    B, T, E = query.shape
    H = num_heads
    D = E // H

    # in_proj  (params already have the softmax scaling folded into Q)
    qkv = linear_pallas(query.reshape(B * T, E),
                        params["w_in_t"], params["b_in"])       # [B*T, 3E]
    qkv = qkv.reshape(B, T, 3 * E)                              # free reshape

    # key_padding_mask (bool, True == pad) -> additive fp32 term [B, 1, S]
    if key_padding_mask is None:
        mask_add = jnp.zeros((B, 1, T), jnp.float32)
    else:
        mask_add = jnp.where(key_padding_mask[:, None, :],
                             jnp.float32(NEG_BIG), jnp.float32(0.0))

    # attn_bias [B*H, T, S] -> [B, H, T, S]  (contiguous, free reshape)
    if attn_bias is None:
        bias = jnp.zeros((B, H, T, T), qkv.dtype)
    else:
        bias = attn_bias.reshape(B, H, T, T)

    # attention with fused out_proj
    return attention_out_proj_pallas(qkv, mask_add, bias,
                                     params["w_out_t"], params["b_out"],
                                     H, D)                      # [B, T, E]


# ----------------------------------------------------------------------------
# Pure-JAX reference (mirrors the PyTorch code path) for verification
# ----------------------------------------------------------------------------
def self_mha_reference(query, key_padding_mask, attn_bias, params,
                       num_heads, scaling_factor=1):
    B, T, E = query.shape
    H = num_heads
    D = E // H
    scaling = (D * scaling_factor) ** (-0.5)

    qkv = query.reshape(B * T, E) @ params["w_in_t"] + params["b_in"]
    qkv = qkv.reshape(B, T, 3, H, D)
    q = jnp.transpose(qkv[:, :, 0], (0, 2, 1, 3)).reshape(B * H, T, D) * scaling
    k = jnp.transpose(qkv[:, :, 1], (0, 2, 1, 3)).reshape(B * H, T, D)
    v = jnp.transpose(qkv[:, :, 2], (0, 2, 1, 3)).reshape(B * H, T, D)

    aw = jnp.einsum("btd,bsd->bts", q, k)                       # [B*H, T, S]
    aw = aw.reshape(B, H, T, T)
    aw = jnp.where(key_padding_mask[:, None, None, :], -jnp.inf, aw)
    aw = aw.reshape(B * H, T, T) + attn_bias
    aw = jax.nn.softmax(aw, axis=-1)
    o = jnp.einsum("bts,bsd->btd", aw, v)
    o = o.reshape(B, H, T, D).transpose(0, 2, 1, 3).reshape(B * T, E)
    out = o @ params["w_out_t"] + params["b_out"]
    return out.reshape(B, T, E)


if __name__ == "__main__":
    bsz, tgt_len, embed_dim, num_heads = 2, 8, 32, 4

    key = jax.random.PRNGKey(0)
    k0, k1, k2, k3, k4, k5 = jax.random.split(key, 6)

    # Deterministic parameter init (nn.Linear shapes; stored pre-transposed).
    raw_params = {
        "w_in_t": jax.random.normal(k0, (embed_dim, 3 * embed_dim),
                                    jnp.float32) * 0.05,
        "b_in": jax.random.normal(k1, (1, 3 * embed_dim), jnp.float32) * 0.02,
        "w_out_t": jax.random.normal(k2, (embed_dim, embed_dim),
                                     jnp.float32) * 0.05,
        "b_out": jax.random.normal(k3, (1, embed_dim), jnp.float32) * 0.02,
    }

    query = jax.random.normal(k4, (bsz, tgt_len, embed_dim), jnp.float32)

    # key_padding_mask: True == padded; keep at least one valid key per row.
    key_padding_mask = jnp.zeros((bsz, tgt_len), dtype=bool)
    key_padding_mask = key_padding_mask.at[0, -2:].set(True)
    key_padding_mask = key_padding_mask.at[1, -1:].set(True)

    attn_bias = jax.random.normal(
        k5, (bsz * num_heads, tgt_len, tgt_len), jnp.float32) * 0.1

    ref = self_mha_reference(query, key_padding_mask, attn_bias, raw_params,
                             num_heads)

    # ---------------- fp32 run (exact parity with the PyTorch math) ---------
    params_f32 = prepare_params(raw_params, num_heads)
    out_f32 = self_mha_forward(query, key_padding_mask, attn_bias,
                               params_f32, num_heads)
    out_f32 = jax.block_until_ready(out_f32)
    assert out_f32.shape == (bsz, tgt_len, embed_dim)
    assert jnp.allclose(out_f32, ref, rtol=2e-3, atol=1e-3), \
        "fp32 mismatch vs reference"

    # ---------------- bf16 run (MXU bf16 rate, halved HBM traffic) ----------
    raw_bf16 = jax.tree_util.tree_map(lambda x: x.astype(jnp.bfloat16),
                                      raw_params)
    params_bf16 = prepare_params(raw_bf16, num_heads)
    out_bf16 = self_mha_forward(query.astype(jnp.bfloat16), key_padding_mask,
                                attn_bias.astype(jnp.bfloat16),
                                params_bf16, num_heads)
    out_bf16 = jax.block_until_ready(out_bf16)
    assert out_bf16.shape == (bsz, tgt_len, embed_dim)
    assert out_bf16.dtype == jnp.bfloat16
    assert jnp.allclose(out_bf16.astype(jnp.float32), ref,
                        rtol=5e-2, atol=5e-2), "bf16 mismatch vs reference"

    print("KERNEL_OK")
</pallas_src>

<mosaic_0001>
module attributes {stable_mosaic.version = 11 : i64} {
  func.func @_linear_kernel(%arg0: i32, %arg1: i32, %arg2: i32, %arg3: memref<16x32xf32, #tpu.memory_space<vmem>>, %arg4: memref<32x96xf32, #tpu.memory_space<vmem>>, %arg5: memref<1x96xf32, #tpu.memory_space<vmem>>, %arg6: memref<16x96xf32, #tpu.memory_space<vmem>>, %arg7: memref<16x96xf32, #tpu.memory_space<vmem>>) attributes {dimension_semantics = [#tpu.dimension_semantics<parallel>, #tpu.dimension_semantics<parallel>, #tpu.dimension_semantics<arbitrary>], iteration_bounds = array<i64: 1, 1, 1>, scalar_prefetch = 0 : i64, scratch_operands = 1 : i64, tpu.core_type = #tpu.core_type<tc>, window_params = [{transform_indices = @transform_0, window_bounds = array<i64: 16, 32>}, {transform_indices = @transform_1, window_bounds = array<i64: 32, 96>}, {transform_indices = @transform_2, window_bounds = array<i64: 1, 96>}, {transform_indices = @transform_3, window_bounds = array<i64: 16, 96>}]} {
    %c0_i32 = arith.constant 0 : i32
    %0 = arith.cmpi eq, %arg2, %c0_i32 : i32
    %1 = arith.extui %0 : i1 to i32
    %c0_i32_0 = arith.constant 0 : i32
    %2 = arith.cmpi ne, %1, %c0_i32_0 : i32
    scf.if %2 {
      %cst_10 = arith.constant 0.000000e+00 : f32
      %12 = vector.broadcast %cst_10 : f32 to vector<16x96xf32>
      %c0_11 = arith.constant 0 : index
      %c0_12 = arith.constant 0 : index
      %13 = vector.load %arg7[%c0_11, %c0_12] : memref<16x96xf32, #tpu.memory_space<vmem>>, vector<16x96xf32>
      tpu.vector_store %arg7[%c0_11, %c0_12], %12 {strides = array<i32>} : memref<16x96xf32, #tpu.memory_space<vmem>>, vector<16x96xf32>,
    } else {
    }
    %c0 = arith.constant 0 : index
    %c0_1 = arith.constant 0 : index
    %3 = vector.load %arg7[%c0, %c0_1] : memref<16x96xf32, #tpu.memory_space<vmem>>, vector<16x96xf32>
    %c0_2 = arith.constant 0 : index
    %c0_3 = arith.constant 0 : index
    %4 = vector.load %arg3[%c0_2, %c0_3] : memref<16x32xf32, #tpu.memory_space<vmem>>, vector<16x32xf32>
    %c0_4 = arith.constant 0 : index
    %c0_5 = arith.constant 0 : index
    %5 = vector.load %arg4[%c0_4, %c0_5] : memref<32x96xf32, #tpu.memory_space<vmem>>, vector<32x96xf32>
    %cst = arith.constant dense<0.000000e+00> : vector<16x96xf32>
    %6 = tpu.matmul %4, %5, %cst {dimension_numbers = #tpu.dot_dimension_numbers<[1], [0], [0], [1], [0, 0, 1, 1], [], []>} : vector<16x32xf32>, vector<32x96xf32>, vector<16x96xf32> -> vector<16x96xf32>
    %7 = arith.addf %3, %6 : vector<16x96xf32>
    %c0_6 = arith.constant 0 : index
    %c0_7 = arith.constant 0 : index
    %8 = vector.load %arg7[%c0_6, %c0_7] : memref<16x96xf32, #tpu.memory_space<vmem>>, vector<16x96xf32>
    tpu.vector_store %arg7[%c0_6, %c0_7], %7 {strides = array<i32>} : memref<16x96xf32, #tpu.memory_space<vmem>>, vector<16x96xf32>,
    %c0_i32_8 = arith.constant 0 : i32
    %9 = arith.cmpi eq, %arg2, %c0_i32_8 : i32
    %10 = arith.extui %9 : i1 to i32
    %c0_i32_9 = arith.constant 0 : i32
    %11 = arith.cmpi ne, %10, %c0_i32_9 : i32
    scf.if %11 {
      %c0_10 = arith.constant 0 : index
      %c0_11 = arith.constant 0 : index
      %12 = vector.load %arg7[%c0_10, %c0_11] : memref<16x96xf32, #tpu.memory_space<vmem>>, vector<16x96xf32>
      %c0_12 = arith.constant 0 : index
      %c0_13 = arith.constant 0 : index
      %13 = vector.load %arg5[%c0_12, %c0_13] : memref<1x96xf32, #tpu.memory_space<vmem>>, vector<1x96xf32>
      %14 = vector.broadcast %13 : vector<1x96xf32> to vector<16x96xf32>
      %15 = arith.addf %12, %14 : vector<16x96xf32>
      %c0_14 = arith.constant 0 : index
      %c0_15 = arith.constant 0 : index
      %16 = vector.load %arg6[%c0_14, %c0_15] : memref<16x96xf32, #tpu.memory_space<vmem>>, vector<16x96xf32>
      tpu.vector_store %arg6[%c0_14, %c0_15], %15 {strides = array<i32>} : memref<16x96xf32, #tpu.memory_space<vmem>>, vector<16x96xf32>,
    } else {
    }
    return
  }
  func.func @transform_0(%arg0: i32, %arg1: i32, %arg2: i32) -> (i32, i32) {
    %c0_i32 = arith.constant 0 : i32
    return %arg0, %arg2 : i32, i32
  }
  func.func @transform_1(%arg0: i32, %arg1: i32, %arg2: i32) -> (i32, i32) {
    %c0_i32 = arith.constant 0 : i32
    return %arg2, %arg1 : i32, i32
  }
  func.func @transform_2(%arg0: i32, %arg1: i32, %arg2: i32) -> (i32, i32) {
    %c0_i32 = arith.constant 0 : i32
    %c0_i32_0 = arith.constant 0 : i32
    return %c0_i32, %arg1 : i32, i32
  }
  func.func @transform_3(%arg0: i32, %arg1: i32, %arg2: i32) -> (i32, i32) {
    %c0_i32 = arith.constant 0 : i32
    return %arg0, %arg1 : i32, i32
  }
}

</mosaic_0001>

<bundles_post_ra>
// kernel: tpu_custom_call.1
= control target key start
LH: loop header
LB: loop body
LE: loop exit
PB: predicated region body
PF: predicated region fallthrough
CT: control target
= control target key end

     0   :  { %8 = vsyncpa [#allocation4], 0  ;;  %s365_s0 = inlined_call_operand.hbm [shape: f32[16,32], index: 0, kind: input, shape index: {}]   ;;  %s366_s1 = inlined_call_operand.hbm [shape: f32[32,96], index: 1, kind: input, shape index: {}]   ;;  %s367_s2 = inlined_call_operand.vmem [shape: f32[1,96], index: 2, kind: input, shape index: {}]   ;;  %s368_s3 = inlined_call_operand.hbm [shape: f32[16,96], index: 3, kind: output, shape index: {}]  }
   0x1   :  { %9 = vsyncpa [#allocation7], 0 }
   0x2   :  { %10 = vsyncpa [#allocation5], 0  ;;  %s285_s12 = smov [#allocation3]   ;;  %s213_s16 = scalar_lea.hbm %s365_s0, 256 }
   0x3   :  { %s16_s13 = sshll.u32 %s285_s12, 4  ;;  %p214_p0 = scmp.ne.s32.totalorder %s365_s0, %s213_s16  ;;  %s17_s13 = int_to_ptr.vmem [resolvable:$true] %s16_s13 }
   0x4   :  { %p217_p1 = scmp.lt.u32.totalorder %s213_s16, %s365_s0 }
   0x6   :  { %p219_p2 = pnand %p217_p1, %p214_p0 }
   0x8   :  { %222 = shalt.err (!%p219_p2)
}
   0x9   :  { %s223_s21 = scalar_lea.vmem %s17_s13, 256  ;;  %p228_p4 = scmp.lt.s32.totalorder %s17_s13, %s17_s13 }
   0xa   :  { %p224_p3 = scmp.ne.s32.totalorder %s17_s13, %s223_s21  ;;  %p229_p5 = scmp.lt.s32.totalorder %s223_s21, %s223_s21 }
   0xc   :  { %p230_p6 = por %p229_p5, %p228_p4 }
   0xe   :  { %p231_p7 = pnand %p230_p6, %p224_p3 }
  0x10   :  { %234 = shalt.err (!%p231_p7)
}
  0x11   :  { %s286_s22 = smov 128   ;;  %s287_s23 = smov 8  }
  0x12   :  { %22 = dma.hbm_to_vmem [thread:$0]  %s365_s0, 256, %s17_s13, [#allocation4], %s286_s22, %s286_s22, %s287_s23  }
  0x13   :  { %s288_s26 = smov [#allocation6]   ;;  %s235_s30 = scalar_lea.hbm %s366_s1, 512 }
  0x14   :  { %s28_s27 = sshll.u32 %s288_s26, 4  ;;  %p236_p8 = scmp.ne.s32.totalorder %s366_s1, %s235_s30  ;;  %s29_s27 = int_to_ptr.vmem [resolvable:$true] %s28_s27 }
  0x15   :  { %p239_p9 = scmp.lt.u32.totalorder %s235_s30, %s366_s1 }
  0x17   :  { %p241_p10 = pnand %p239_p9, %p236_p8 }
  0x19   :  { %244 = shalt.err (!%p241_p10)
}
  0x1a   :  { %s245_s8 = scalar_lea.vmem %s29_s27, 512  ;;  %p250_p12 = scmp.lt.s32.totalorder %s29_s27, %s29_s27 }
  0x1b   :  { %p246_p11 = scmp.ne.s32.totalorder %s29_s27, %s245_s8  ;;  %p251_p13 = scmp.lt.s32.totalorder %s245_s8, %s245_s8 }
  0x1d   :  { %p252_p0 = por %p251_p13, %p250_p12 }
  0x1f   :  { %p253_p1 = pnand %p252_p0, %p246_p11 }
  0x21   :  { %256 = shalt.err (!%p253_p1)
}
  0x22   :  { %34 = dma.hbm_to_vmem [thread:$0]  %s366_s1, 512, %s29_s27, [#allocation7], %s286_s22, %s286_s22, %s287_s23  }
  0x23   :  { %279 = dma.done.wait [#allocation4], 256  }
  0x24   :  { %280 = vsyncadd [#allocation4], 4294967040 }
  0x25   :  { %281 = dma.done.wait [#allocation7], 512  }
  0x26   :  { %282 = vsyncadd [#allocation7], 4294966784  ;;  %vm47_vm0 = vcmask 785408   ;;  %v289_v0 = vmov 0.0   ;;  %vm58_vm1 = vcmask 261120   ;;  %v54_v1 = vld [vmem:[#allocation6] sm:$0xff] }
  0x27   :  { %49 = vst.msk [vmem:[#allocation2 + $0x8] sm:$0xff] %vm47_vm0, %v289_v0  ;;  %48 = vst.msk [vmem:[#allocation2] sm:$0xff] %vm47_vm0, %v289_v0  ;;  %v55_v2 = vld [vmem:[#allocation6 + $0x8] sm:$0xff]  ;;  %v56_v3 = vld [vmem:[#allocation6 + $0x10] sm:$0xff]  ;;  %s290_s11 = smov [#allocation8]  }
  0x28   :  { %v199_v4 = vpack.c.bf16 %v55_v2, %v54_v1  ;;  %v57_v5 = vld [vmem:[#allocation6 + $0x18] sm:$0xff]  ;;  %v52_v6 = vld [vmem:[#allocation3] sm:$0xff]  ;;  %v181_v15 = vld [vmem:[%s367_s2] ss:$0 sm:$0xff]  ;;  %s166_s12 = sshll.u32 %s290_s11, 4  ;;  %s167_s12 = int_to_ptr.vmem [resolvable:$true] %s166_s12 }
  0x29   :  { %v203_v7 = vpack.c.bf16 %v57_v5, %v56_v3  ;;  %196 = vmatprep.mubr.msk.f32.mxu0 %vm58_vm1, %v52_v6  ;;  %v53_v8 = vld [vmem:[#allocation3 + $0x8] sm:$0xff]  ;;  %s257_s13 = scalar_lea.vmem %s167_s12, 256  ;;  %p262_p3 = scmp.lt.s32.totalorder %s167_s12, %s167_s12 }
  0x2a   :  { %200 = vmatprep.subr.bf16.mxu0 %v199_v4  ;;  %p258_p2 = scmp.ne.s32.totalorder %s167_s12, %s257_s13  ;;  %p263_p4 = scmp.lt.s32.totalorder %s257_s13, %s257_s13 }
  0x2b   :  { %202 = vmatpush3.bf16.msra.mxu0 %v199_v4 }
  0x2c   :  { %204 = vmatprep.subr.bf16.mxu0 %v203_v7  ;;  %p264_p5 = por %p263_p4, %p262_p3 }
  0x2e   :  { %v51_v9 = vld [vmem:[#allocation2 + $0x8] sm:$0xff]  ;;  %v50_v10 = vld [vmem:[#allocation2] sm:$0xff]  ;;  %p265_p6 = pnand %p264_p5, %p258_p2 }
  0x2f   :  { %206 = vmatpush3.bf16.msra.mxu0 %v203_v7 }
  0x32   :  { %197 = vmatmul.mubr.msk.f32.vlgmr.msra.gmra.mrb[0].mxu0 %vm58_vm1, %v53_v8 }
 0x105   :  { %v198_v11 = vpop.f32.mrb[0].mxu0 }
 0x106   :  { %v141_v12 = vadd.f32 %v198_v11, %v51_v9  ;;  %v131_v13 = vpop.f32.mrb[1].mxu0 }
 0x107   :  { %v140_v14 = vadd.f32 %v131_v13, %v50_v10 }
 0x108   :  { %144 = vst.msk [vmem:[#allocation2 + $0x8] sm:$0xff] %vm47_vm0, %v141_v12 }
 0x109   :  { %143 = vst.msk [vmem:[#allocation2] sm:$0xff] %vm47_vm0, %v140_v14 }
 0x10f   :  { %v149_v16 = vld [vmem:[#allocation2 + $0x8] sm:$0xff] }
 0x110   :  { %v148_v17 = vld [vmem:[#allocation2] sm:$0xff]  ;;  %v158_v18 = vadd.f32 %v181_v15, %v149_v16 }
 0x111   :  { %v157_v19 = vadd.f32 %v181_v15, %v148_v17 }
 0x112   :  { %160 = vst.msk [vmem:[#allocation8 + $0x8] sm:$0xff] %vm47_vm0, %v158_v18 }
 0x113   :  { %159 = vst.msk [vmem:[#allocation8] sm:$0xff] %vm47_vm0, %v157_v19 }
 0x114   :  { %268 = shalt.err (!%p265_p6)
}
 0x115   :  { %s269_s15 = scalar_lea.hbm %s368_s3, 256 }
 0x116   :  { %p270_p7 = scmp.ne.s32.totalorder %s368_s3, %s269_s15  ;;  %p273_p8 = scmp.lt.u32.totalorder %s269_s15, %s368_s3 }
 0x118   :  { %p275_p9 = pnand %p273_p8, %p270_p7 }
 0x11a   :  { %278 = shalt.err (!%p275_p9)
}
 0x11b   :  { %172 = dma.vmem_to_hbm [thread:$0]  %s167_s12, 256, %s368_s3, [#allocation5], %s286_s22, %s286_s22, %s287_s23  }
 0x11c   :  { %283 = dma.done.wait [#allocation5], 256  }
 0x11d   :  { %284 = vsyncadd [#allocation5], 4294967040 }
 0x11e   :  { %176 = vsyncpa [#allocation4], 1 }
 0x11f   :  { %177 = vsyncpa [#allocation7], 1 }
 0x120   :  { %178 = vsyncpa [#allocation5], 1 }

</bundles_post_ra>
